<compile_context>
chip_gen: v5e
topology: v5e:2x2
jax: 0.10.0
libtpu: 0.0.40
codegen_flags: <defaults>
</compile_context>

<pallas_src>
import functools
import math
from typing import NamedTuple

import jax
import jax.numpy as jnp
from jax.experimental import pallas as pl
from jax.experimental.pallas import tpu as pltpu


def _round_up(a: int, b: int) -> int:
    return (a + b - 1) // b * b


# ----------------------------- Pallas kernel -------------------------------
def _kan_kernel(x_ref, rep_ref, gflat_ref, rlo_ref, nrhi_ref, w_ref, o_ref,
                feat_ref, *, spline_order: int, in_features: int,
                k_valid: int, k_pad: int):
    """Grid = (row_tiles, out_tiles); out is the inner ('arbitrary') axis.

    Features (B-spline bases + SiLU block) are computed once per row tile into
    the VMEM scratch `feat_ref` (when out_idx == 0) and reused for every OUT
    tile, which only performs one fused MXU dot.
    """
    @pl.when(pl.program_id(1) == 0)
    def _compute_features():
        tm = x_ref.shape[0]
        x = x_ref[...].astype(jnp.float32)                       # (TM, IN)
        silu = x * jax.nn.sigmoid(x)                             # base activation

        # Replicate x along the flattened (coeff, in) lane axis with a tiny 0/1
        # MXU matmul: xt[t, j*IN + i] = x[t, i].  Avoids a lane relayout.
        xt = jnp.dot(x, rep_ref[...],
                     preferred_element_type=jnp.float32)         # (TM, K_pad)
        # Hoisted knot differences: diff[t, j*IN+i] = x[t,i] - grid[i, j]
        diff = xt - gflat_ref[...]

        # order-0 bases: grid[j] <= x < grid[j+1]
        d_next = pltpu.roll(diff, shift=k_pad - in_features, axis=1)
        bases = jnp.where(jnp.logical_and(diff >= 0.0, d_next < 0.0), 1.0, 0.0)

        # Cox-de Boor recursion, lane-flattened.  Reciprocal denominators are
        # precomputed in the wrapper (hi-term sign folded into nrhi), so each
        # step is pure multiply/add; shifted operands ride the XLU via roll.
        for k in range(1, spline_order + 1):
            d_hi = pltpu.roll(diff, shift=k_pad - (k + 1) * in_features, axis=1)
            b_hi = pltpu.roll(bases, shift=k_pad - in_features, axis=1)
            bases = ((diff * rlo_ref[k - 1:k, :]) * bases
                     + (d_hi * nrhi_ref[k - 1:k, :]) * b_hi)

        # Fused lane-dense feature slab: [ B-spline bases | SiLU(x) | zeros ]
        lane = jax.lax.broadcasted_iota(jnp.int32, (tm, k_pad), 1)
        feat_ref[...] = jnp.where(lane < k_valid, bases, 0.0).astype(feat_ref.dtype)
        feat_ref[:, k_valid:k_valid + in_features] = silu.astype(feat_ref.dtype)

    # Single fused dot per OUT tile: spline + base paths in one MXU pass.
    o_ref[...] = jnp.dot(feat_ref[...], w_ref[...],
                         preferred_element_type=jnp.float32).astype(o_ref.dtype)


# --------------------- one-time parameter preparation ------------------------
class KANParams(NamedTuple):
    gflat: jax.Array        # (1, k_pad)       flattened grid knots
    rep: jax.Array          # (in, k_pad)      0/1 lane-replication matrix
    rlo: jax.Array          # (order, k_pad)   1/(g[j+k]-g[j])   (0 on repeats/pad)
    nrhi: jax.Array         # (order, k_pad)  -1/(g[j+k+1]-g[j+1])
    w_fused: jax.Array      # (k_pad, out_pad) [scaled spline W ; base W ; 0]
    in_features: int
    out_features: int
    out_pad: int
    k_pad: int
    n_coeff: int
    spline_order: int


def prepare_kan_params(grid, base_weight, spline_weight, spline_scaler=None, *,
                       spline_order: int, matmul_dtype=jnp.float32) -> KANParams:
    """One-time preprocessing of KANLinear parameters (do NOT call per forward)."""
    grid = jnp.asarray(grid, jnp.float32)                 # (in, W)
    in_features, W = grid.shape
    out_features = base_weight.shape[0]
    n_coeff = spline_weight.shape[-1]
    assert W == n_coeff + spline_order + 1

    gT = grid.T                                           # (W, in)
    k_valid = n_coeff * in_features
    k_flat = W * in_features
    k_pad = _round_up(k_flat, 128)

    gflat = jnp.zeros((1, k_pad), jnp.float32).at[0, :k_flat].set(gT.reshape(-1))
    rep = (jnp.arange(k_pad)[None, :] % in_features
           == jnp.arange(in_features)[:, None]).astype(jnp.float32)

    # Reciprocal Cox-de Boor denominators (grid-only constants), safe-divide so
    # repeated knots (possible after update_grid) give 0 instead of inf/NaN.
    n_rows = max(spline_order, 1)
    rlo = jnp.zeros((n_rows, k_pad), jnp.float32)
    nrhi = jnp.zeros((n_rows, k_pad), jnp.float32)
    for k in range(1, spline_order + 1):
        wk = W - k - 1
        d_lo = gT[k:k + wk] - gT[:wk]                     # g[j+k]   - g[j]
        d_hi = gT[k + 1:k + 1 + wk] - gT[1:1 + wk]        # g[j+k+1] - g[j+1]
        r_lo = jnp.where(d_lo == 0, 0.0, 1.0 / jnp.where(d_lo == 0, 1.0, d_lo))
        r_hi = jnp.where(d_hi == 0, 0.0, 1.0 / jnp.where(d_hi == 0, 1.0, d_hi))
        rlo = rlo.at[k - 1, :wk * in_features].set(r_lo.reshape(-1))
        nrhi = nrhi.at[k - 1, :wk * in_features].set(-r_hi.reshape(-1))

    # Fused weight: rows [0, C*in) = pre-scaled spline weight in (coeff, in)
    # order (matches the kernel's j*IN+i feature layout), rows
    # [C*in, C*in+in) = base weight, rest zeros; OUT lane-padded to 128.
    out_pad = _round_up(out_features, 128)
    sw = jnp.asarray(spline_weight, jnp.float32)
    if spline_scaler is not None:
        sw = sw * jnp.asarray(spline_scaler, jnp.float32)[:, :, None]
    w_spline = jnp.transpose(sw, (2, 1, 0)).reshape(k_valid, out_features)
    w_base = jnp.asarray(base_weight, jnp.float32).T      # (in, out)
    w_fused = jnp.zeros((k_pad, out_pad), jnp.float32)
    w_fused = w_fused.at[:k_valid, :out_features].set(w_spline)
    w_fused = w_fused.at[k_valid:k_valid + in_features, :out_features].set(w_base)
    w_fused = w_fused.astype(matmul_dtype)

    return KANParams(gflat, rep, rlo, nrhi, w_fused, in_features, out_features,
                     out_pad, k_pad, n_coeff, spline_order)


def _default_vmem_limit() -> int:
    try:
        cap = int(pltpu.get_tpu_info().vmem_capacity_bytes)
    except Exception:  # unknown chip / older API: assume the smallest (v7x)
        cap = 64 * 1024 * 1024
    # Leave pipelining headroom: ~48 MiB on v7x (64 MiB), ~96 MiB on v5e/v6e.
    return min(cap * 3 // 4, 100 * 1024 * 1024)


# ------------------------------ forward wrapper ------------------------------
def kan_linear(x, params: KANParams, *, tm: int = 256, vmem_limit_bytes=None):
    """KANLinear forward.  x: (..., in_features) -> (..., out_features)."""
    orig_shape = x.shape
    in_features = params.in_features
    assert orig_shape[-1] == in_features
    n = math.prod(orig_shape[:-1]) if len(orig_shape) > 1 else 1
    x2 = x.reshape(n, in_features)

    if vmem_limit_bytes is None:
        vmem_limit_bytes = _default_vmem_limit()

    # Row tile: dtype-aligned, clamped to the batch and to a VMEM budget
    # (~8 live f32 (tm, k_pad) recursion intermediates must fit in ~1/3 budget).
    row_align = {4: 8, 2: 16, 1: 32}.get(jnp.dtype(x.dtype).itemsize, 8)
    max_tm = (vmem_limit_bytes // 3) // (8 * params.k_pad * 4)
    max_tm = max(row_align, (max_tm // row_align) * row_align)
    tm_req = max(row_align, (tm // row_align) * row_align)
    tm_eff = min(tm_req, max_tm, _round_up(n, row_align))

    n_pad = _round_up(n, tm_eff)
    if n_pad != n:                      # fast path: no pad when already aligned
        x2 = jnp.pad(x2, ((0, n_pad - n), (0, 0)))

    out_pad = params.out_pad
    # 256-wide OUT tiles fill the v6e/v7x 256-deep MXU; 128 otherwise (v5e-ok).
    tn = 256 if out_pad % 256 == 0 else 128

    kernel = functools.partial(
        _kan_kernel,
        spline_order=params.spline_order,
        in_features=in_features,
        k_valid=params.n_coeff * in_features,
        k_pad=params.k_pad)

    feat_dtype = params.w_fused.dtype

    out = pl.pallas_call(
        kernel,
        out_shape=jax.ShapeDtypeStruct((n_pad, out_pad), x.dtype),
        grid_spec=pltpu.PrefetchScalarGridSpec(
            num_scalar_prefetch=0,
            grid=(n_pad // tm_eff, out_pad // tn),
            in_specs=[
                pl.BlockSpec((tm_eff, in_features), lambda i, o: (i, 0)),
                pl.BlockSpec(params.rep.shape, lambda i, o: (0, 0)),
                pl.BlockSpec(params.gflat.shape, lambda i, o: (0, 0)),
                pl.BlockSpec(params.rlo.shape, lambda i, o: (0, 0)),
                pl.BlockSpec(params.nrhi.shape, lambda i, o: (0, 0)),
                pl.BlockSpec((params.k_pad, tn), lambda i, o: (0, o)),
            ],
            out_specs=pl.BlockSpec((tm_eff, tn), lambda i, o: (i, o)),
            scratch_shapes=[pltpu.VMEM((tm_eff, params.k_pad), feat_dtype)]),
        compiler_params=pltpu.CompilerParams(
            dimension_semantics=("parallel", "arbitrary"),
            vmem_limit_bytes=int(vmem_limit_bytes)),
    )(x2, params.rep, params.gflat, params.rlo, params.nrhi, params.w_fused)

    if n_pad != n:
        out = out[:n]
    if out_pad != params.out_features:
        out = out[:, :params.out_features]
    return out.reshape(*orig_shape[:-1], params.out_features)


# ------------------------- pure-JAX reference --------------------------------
def _b_splines_ref(x, grid, spline_order):
    xe = x[:, :, None]
    bases = jnp.logical_and(xe >= grid[:, :-1], xe < grid[:, 1:]).astype(x.dtype)
    for k in range(1, spline_order + 1):
        bases = ((xe - grid[:, :-(k + 1)]) / (grid[:, k:-1] - grid[:, :-(k + 1)])
                 * bases[:, :, :-1]
                 + (grid[:, k + 1:] - xe) / (grid[:, k + 1:] - grid[:, 1:-k])
                 * bases[:, :, 1:])
    return bases


def _kan_linear_ref(x, grid, base_weight, spline_weight, spline_scaler,
                    spline_order):
    orig_shape = x.shape
    in_features = orig_shape[-1]
    out_features = base_weight.shape[0]
    x2 = x.reshape(-1, in_features)
    hp = jax.lax.Precision.HIGHEST
    base_out = jnp.dot(jax.nn.silu(x2), base_weight.T, precision=hp)
    bases = _b_splines_ref(x2, grid, spline_order)
    sw = (spline_weight * spline_scaler[:, :, None]).reshape(out_features, -1)
    spline_out = jnp.dot(bases.reshape(x2.shape[0], -1), sw.T, precision=hp)
    out = base_out + spline_out
    return out.reshape(*orig_shape[:-1], out_features)


# ---------------------------------- main -------------------------------------
if __name__ == "__main__":
    # Module configuration (defaults from KANLinear).
    in_features = 32
    out_features = 64
    grid_size = 5
    spline_order = 3
    grid_range = [-1.0, 1.0]
    n_coeff = grid_size + spline_order                      # 8

    # grid buffer: (in, grid_size + 2*spline_order + 1), as in __init__
    h = (grid_range[1] - grid_range[0]) / grid_size
    grid_1d = (jnp.arange(-spline_order, grid_size + spline_order + 1,
                          dtype=jnp.float32) * h + grid_range[0])
    grid_buf = jnp.broadcast_to(grid_1d, (in_features, grid_1d.shape[0]))

    # Deterministic synthetic parameter init (shapes as in the module).
    # TODO(synk): reset_parameters() uses kaiming_uniform + a lstsq-based spline
    # init (curve2coeff); here we use deterministic uniform values of the same
    # shapes.
    key = jax.random.PRNGKey(0)
    k_bw, k_sw, k_sc, k_x = jax.random.split(key, 4)
    base_weight = jax.random.uniform(
        k_bw, (out_features, in_features), jnp.float32, -0.3, 0.3)
    spline_weight = jax.random.uniform(
        k_sw, (out_features, in_features, n_coeff), jnp.float32, -0.1, 0.1)
    spline_scaler = jax.random.uniform(
        k_sc, (out_features, in_features), jnp.float32, -0.3, 0.3)

    # Small input consistent with the forward: (..., in_features).
    x = jax.random.uniform(k_x, (2, 8, in_features), jnp.float32, -1.0, 1.0)

    ref = _kan_linear_ref(x, grid_buf, base_weight, spline_weight,
                          spline_scaler, spline_order)

    # f32 matmul operands. Tolerance allows for the TPU MXU's default f32 dot
    # precision (bf16-pass based) on either side; structural errors are O(0.1+).
    params_f32 = prepare_kan_params(grid_buf, base_weight, spline_weight,
                                    spline_scaler, spline_order=spline_order,
                                    matmul_dtype=jnp.float32)
    out = jax.block_until_ready(kan_linear(x, params_f32))
    assert out.shape == (2, 8, out_features)
    err = float(jnp.max(jnp.abs(out - ref)))
    assert jnp.allclose(out, ref, atol=2e-2, rtol=2e-2), \
        f"mismatch (f32) vs JAX reference, max abs err {err}"

    # bf16 matmul operands with f32 accumulation (fast path on v5e/v6e/v7x).
    params_bf16 = prepare_kan_params(grid_buf, base_weight, spline_weight,
                                     spline_scaler, spline_order=spline_order,
                                     matmul_dtype=jnp.bfloat16)
    out_bf16 = jax.block_until_ready(kan_linear(x, params_bf16))
    err_bf = float(jnp.max(jnp.abs(out_bf16 - ref)))
    assert jnp.allclose(out_bf16, ref, atol=6e-2, rtol=6e-2), \
        f"mismatch (bf16) vs JAX reference, max abs err {err_bf}"

    print("KERNEL_OK")
</pallas_src>

<mosaic_0001>
module attributes {stable_mosaic.version = 11 : i64} {
  func.func @_kan_kernel(%arg0: i32, %arg1: i32, %arg2: memref<16x32xf32, #tpu.memory_space<vmem>>, %arg3: memref<32x384xf32, #tpu.memory_space<vmem>>, %arg4: memref<1x384xf32, #tpu.memory_space<vmem>>, %arg5: memref<3x384xf32, #tpu.memory_space<vmem>>, %arg6: memref<3x384xf32, #tpu.memory_space<vmem>>, %arg7: memref<384x128xf32, #tpu.memory_space<vmem>>, %arg8: memref<16x128xf32, #tpu.memory_space<vmem>>, %arg9: memref<16x384xf32, #tpu.memory_space<vmem>>) attributes {dimension_semantics = [#tpu.dimension_semantics<parallel>, #tpu.dimension_semantics<arbitrary>], iteration_bounds = array<i64: 1, 1>, scalar_prefetch = 0 : i64, scratch_operands = 1 : i64, tpu.core_type = #tpu.core_type<tc>, window_params = [{transform_indices = @transform_0, window_bounds = array<i64: 16, 32>}, {pipeline_mode = #tpu.pipeline_mode<synchronous>, transform_indices = @transform_1, window_bounds = array<i64: 32, 384>}, {pipeline_mode = #tpu.pipeline_mode<synchronous>, transform_indices = @transform_2, window_bounds = array<i64: 1, 384>}, {pipeline_mode = #tpu.pipeline_mode<synchronous>, transform_indices = @transform_3, window_bounds = array<i64: 3, 384>}, {pipeline_mode = #tpu.pipeline_mode<synchronous>, transform_indices = @transform_4, window_bounds = array<i64: 3, 384>}, {transform_indices = @transform_5, window_bounds = array<i64: 384, 128>}, {transform_indices = @transform_6, window_bounds = array<i64: 16, 128>}]} {
    %c0_i32 = arith.constant 0 : i32
    %0 = arith.cmpi eq, %arg1, %c0_i32 : i32
    %1 = arith.extui %0 : i1 to i32
    %c0_i32_0 = arith.constant 0 : i32
    %2 = arith.cmpi ne, %1, %c0_i32_0 : i32
    scf.if %2 {
      %c0_6 = arith.constant 0 : index
      %c0_7 = arith.constant 0 : index
      %7 = vector.load %arg2[%c0_6, %c0_7] : memref<16x32xf32, #tpu.memory_space<vmem>>, vector<16x32xf32>
      %8 = arith.negf %7 : vector<16x32xf32>
      %9 = math.exp %8 : vector<16x32xf32>
      %cst_8 = arith.constant 1.000000e+00 : f32
      %10 = vector.broadcast %cst_8 : f32 to vector<16x32xf32>
      %11 = arith.addf %10, %9 : vector<16x32xf32>
      %12 = arith.divf %10, %11 : vector<16x32xf32>
      %13 = arith.mulf %7, %12 : vector<16x32xf32>
      %c0_9 = arith.constant 0 : index
      %c0_10 = arith.constant 0 : index
      %14 = vector.load %arg3[%c0_9, %c0_10] : memref<32x384xf32, #tpu.memory_space<vmem>>, vector<32x384xf32>
      %cst_11 = arith.constant dense<0.000000e+00> : vector<16x384xf32>
      %15 = tpu.matmul %7, %14, %cst_11 {dimension_numbers = #tpu.dot_dimension_numbers<[1], [0], [0], [1], [0, 0, 1, 1], [], []>} : vector<16x32xf32>, vector<32x384xf32>, vector<16x384xf32> -> vector<16x384xf32>
      %c0_12 = arith.constant 0 : index
      %c0_13 = arith.constant 0 : index
      %16 = vector.load %arg4[%c0_12, %c0_13] : memref<1x384xf32, #tpu.memory_space<vmem>>, vector<1x384xf32>
      %17 = vector.broadcast %16 : vector<1x384xf32> to vector<16x384xf32>
      %18 = arith.subf %15, %17 : vector<16x384xf32>
      %c352_i32 = arith.constant 352 : i32
      %19 = tpu.dynamic_rotate %18 by %c352_i32 dim 1 : vector<16x384xf32>, i32 -> vector<16x384xf32>
      %cst_14 = arith.constant 0.000000e+00 : f32
      %20 = vector.broadcast %cst_14 : f32 to vector<16x384xf32>
      %21 = arith.cmpf oge, %18, %20 : vector<16x384xf32>
      %cst_15 = arith.constant 0.000000e+00 : f32
      %22 = vector.broadcast %cst_15 : f32 to vector<16x384xf32>
      %23 = arith.cmpf olt, %19, %22 : vector<16x384xf32>
      %24 = arith.andi %21, %23 : vector<16x384xi1>
      %cst_16 = arith.constant 1.000000e+00 : f32
      %cst_17 = arith.constant 0.000000e+00 : f32
      %25 = vector.broadcast %cst_16 : f32 to vector<16x384xf32>
      %26 = vector.broadcast %cst_17 : f32 to vector<16x384xf32>
      %27 = arith.select %24, %25, %26 : vector<16x384xi1>, vector<16x384xf32>
      %c320_i32 = arith.constant 320 : i32
      %28 = tpu.dynamic_rotate %18 by %c320_i32 dim 1 : vector<16x384xf32>, i32 -> vector<16x384xf32>
      %c352_i32_18 = arith.constant 352 : i32
      %29 = tpu.dynamic_rotate %27 by %c352_i32_18 dim 1 : vector<16x384xf32>, i32 -> vector<16x384xf32>
      %c0_19 = arith.constant 0 : index
      %c0_20 = arith.constant 0 : index
      %30 = vector.load %arg5[%c0_19, %c0_20] : memref<3x384xf32, #tpu.memory_space<vmem>>, vector<1x384xf32>
      %31 = vector.broadcast %30 : vector<1x384xf32> to vector<16x384xf32>
      %32 = arith.mulf %18, %31 : vector<16x384xf32>
      %33 = arith.mulf %32, %27 : vector<16x384xf32>
      %c0_21 = arith.constant 0 : index
      %c0_22 = arith.constant 0 : index
      %34 = vector.load %arg6[%c0_21, %c0_22] : memref<3x384xf32, #tpu.memory_space<vmem>>, vector<1x384xf32>
      %35 = vector.broadcast %34 : vector<1x384xf32> to vector<16x384xf32>
      %36 = arith.mulf %28, %35 : vector<16x384xf32>
      %37 = arith.mulf %36, %29 : vector<16x384xf32>
      %38 = arith.addf %33, %37 : vector<16x384xf32>
      %c288_i32 = arith.constant 288 : i32
      %39 = tpu.dynamic_rotate %18 by %c288_i32 dim 1 : vector<16x384xf32>, i32 -> vector<16x384xf32>
      %c352_i32_23 = arith.constant 352 : i32
      %40 = tpu.dynamic_rotate %38 by %c352_i32_23 dim 1 : vector<16x384xf32>, i32 -> vector<16x384xf32>
      %c1 = arith.constant 1 : index
      %c0_24 = arith.constant 0 : index
      %41 = vector.load %arg5[%c1, %c0_24] : memref<3x384xf32, #tpu.memory_space<vmem>>, vector<1x384xf32>
      %42 = vector.broadcast %41 : vector<1x384xf32> to vector<16x384xf32>
      %43 = arith.mulf %18, %42 : vector<16x384xf32>
      %44 = arith.mulf %43, %38 : vector<16x384xf32>
      %c1_25 = arith.constant 1 : index
      %c0_26 = arith.constant 0 : index
      %45 = vector.load %arg6[%c1_25, %c0_26] : memref<3x384xf32, #tpu.memory_space<vmem>>, vector<1x384xf32>
      %46 = vector.broadcast %45 : vector<1x384xf32> to vector<16x384xf32>
      %47 = arith.mulf %39, %46 : vector<16x384xf32>
      %48 = arith.mulf %47, %40 : vector<16x384xf32>
      %49 = arith.addf %44, %48 : vector<16x384xf32>
      %c256_i32 = arith.constant 256 : i32
      %50 = tpu.dynamic_rotate %18 by %c256_i32 dim 1 : vector<16x384xf32>, i32 -> vector<16x384xf32>
      %c352_i32_27 = arith.constant 352 : i32
      %51 = tpu.dynamic_rotate %49 by %c352_i32_27 dim 1 : vector<16x384xf32>, i32 -> vector<16x384xf32>
      %c2 = arith.constant 2 : index
      %c0_28 = arith.constant 0 : index
      %52 = vector.load %arg5[%c2, %c0_28] : memref<3x384xf32, #tpu.memory_space<vmem>>, vector<1x384xf32>
      %53 = vector.broadcast %52 : vector<1x384xf32> to vector<16x384xf32>
      %54 = arith.mulf %18, %53 : vector<16x384xf32>
      %55 = arith.mulf %54, %49 : vector<16x384xf32>
      %c2_29 = arith.constant 2 : index
      %c0_30 = arith.constant 0 : index
      %56 = vector.load %arg6[%c2_29, %c0_30] : memref<3x384xf32, #tpu.memory_space<vmem>>, vector<1x384xf32>
      %57 = vector.broadcast %56 : vector<1x384xf32> to vector<16x384xf32>
      %58 = arith.mulf %50, %57 : vector<16x384xf32>
      %59 = arith.mulf %58, %51 : vector<16x384xf32>
      %60 = arith.addf %55, %59 : vector<16x384xf32>
      %61 = tpu.iota {dimensions = array<i32: 1>} : vector<16x384xi32>
      %c256_i32_31 = arith.constant 256 : i32
      %62 = vector.broadcast %c256_i32_31 : i32 to vector<16x384xi32>
      %63 = arith.cmpi slt, %61, %62 : vector<16x384xi32>
      %cst_32 = arith.constant 0.000000e+00 : f32
      %64 = vector.broadcast %cst_32 : f32 to vector<16x384xf32>
      %65 = arith.select %63, %60, %64 : vector<16x384xi1>, vector<16x384xf32>
      %c0_33 = arith.constant 0 : index
      %c0_34 = arith.constant 0 : index
      %66 = vector.load %arg9[%c0_33, %c0_34] : memref<16x384xf32, #tpu.memory_space<vmem>>, vector<16x384xf32>
      tpu.vector_store %arg9[%c0_33, %c0_34], %65 {strides = array<i32>} : memref<16x384xf32, #tpu.memory_space<vmem>>, vector<16x384xf32>,
      %c0_35 = arith.constant 0 : index
      %c256 = arith.constant 256 : index
      %67 = vector.load %arg9[%c0_35, %c256] : memref<16x384xf32, #tpu.memory_space<vmem>>, vector<16x32xf32>
      tpu.vector_store %arg9[%c0_35, %c256], %13 {strides = array<i32>} : memref<16x384xf32, #tpu.memory_space<vmem>>, vector<16x32xf32>,
    } else {
    }
    %c0 = arith.constant 0 : index
    %c0_1 = arith.constant 0 : index
    %3 = vector.load %arg9[%c0, %c0_1] : memref<16x384xf32, #tpu.memory_space<vmem>>, vector<16x384xf32>
    %c0_2 = arith.constant 0 : index
    %c0_3 = arith.constant 0 : index
    %4 = vector.load %arg7[%c0_2, %c0_3] : memref<384x128xf32, #tpu.memory_space<vmem>>, vector<384x128xf32>
    %cst = arith.constant dense<0.000000e+00> : vector<16x128xf32>
    %5 = tpu.matmul %3, %4, %cst {dimension_numbers = #tpu.dot_dimension_numbers<[1], [0], [0], [1], [0, 0, 1, 1], [], []>} : vector<16x384xf32>, vector<384x128xf32>, vector<16x128xf32> -> vector<16x128xf32>
    %c0_4 = arith.constant 0 : index
    %c0_5 = arith.constant 0 : index
    %6 = vector.load %arg8[%c0_4, %c0_5] : memref<16x128xf32, #tpu.memory_space<vmem>>, vector<16x128xf32>
    tpu.vector_store %arg8[%c0_4, %c0_5], %5 {strides = array<i32>} : memref<16x128xf32, #tpu.memory_space<vmem>>, vector<16x128xf32>,
    return
  }
  func.func @transform_0(%arg0: i32, %arg1: i32) -> (i32, i32) {
    %c0_i32 = arith.constant 0 : i32
    %c0_i32_0 = arith.constant 0 : i32
    return %arg0, %c0_i32 : i32, i32
  }
  func.func @transform_1(%arg0: i32, %arg1: i32) -> (i32, i32) {
    %c0_i32 = arith.constant 0 : i32
    %c0_i32_0 = arith.constant 0 : i32
    %c0_i32_1 = arith.constant 0 : i32
    return %c0_i32, %c0_i32_0 : i32, i32
  }
  func.func @transform_2(%arg0: i32, %arg1: i32) -> (i32, i32) {
    %c0_i32 = arith.constant 0 : i32
    %c0_i32_0 = arith.constant 0 : i32
    %c0_i32_1 = arith.constant 0 : i32
    return %c0_i32, %c0_i32_0 : i32, i32
  }
  func.func @transform_3(%arg0: i32, %arg1: i32) -> (i32, i32) {
    %c0_i32 = arith.constant 0 : i32
    %c0_i32_0 = arith.constant 0 : i32
    %c0_i32_1 = arith.constant 0 : i32
    return %c0_i32, %c0_i32_0 : i32, i32
  }
  func.func @transform_4(%arg0: i32, %arg1: i32) -> (i32, i32) {
    %c0_i32 = arith.constant 0 : i32
    %c0_i32_0 = arith.constant 0 : i32
    %c0_i32_1 = arith.constant 0 : i32
    return %c0_i32, %c0_i32_0 : i32, i32
  }
  func.func @transform_5(%arg0: i32, %arg1: i32) -> (i32, i32) {
    %c0_i32 = arith.constant 0 : i32
    %c0_i32_0 = arith.constant 0 : i32
    return %c0_i32, %arg1 : i32, i32
  }
  func.func @transform_6(%arg0: i32, %arg1: i32) -> (i32, i32) {
    %c0_i32 = arith.constant 0 : i32
    return %arg0, %arg1 : i32, i32
  }
}

</mosaic_0001>

<bundles_post_ra>
// kernel: tpu_custom_call.1
= control target key start
LH: loop header
LB: loop body
LE: loop exit
PB: predicated region body
PF: predicated region fallthrough
CT: control target
= control target key end

     0   :  { %11 = vsyncpa [#allocation4], 0  ;;  %s1239_s0 = inlined_call_operand.hbm [shape: f32[16,32], index: 0, kind: input, shape index: {}]   ;;  %s1240_s1 = inlined_call_operand.hbm [shape: f32[32,384], index: 1, kind: input, shape index: {}]   ;;  %s1241_s2 = inlined_call_operand.hbm [shape: f32[1,384], index: 2, kind: input, shape index: {}]   ;;  %s1242_s3 = inlined_call_operand.hbm [shape: f32[3,384], index: 3, kind: input, shape index: {}]   ;;  %s1243_s4 = inlined_call_operand.hbm [shape: f32[3,384], index: 4, kind: input, shape index: {}]   ;;  %s1244_s5 = inlined_call_operand.hbm [shape: f32[384,128], index: 5, kind: input, shape index: {}]   ;;  %s1245_s6 = inlined_call_operand.hbm [shape: f32[16,128], index: 6, kind: output, shape index: {}]  }
   0x1   :  { %12 = vsyncpa [#allocation7], 0 }
   0x2   :  { %13 = vsyncpa [#allocation10], 0 }
   0x3   :  { %14 = vsyncpa [#allocation13], 0  ;;  %s33_s23 = sshll.u32 %s1240_s1, 4  ;;  %s34_s23 = int_to_ptr.hbm [resolvable:$true] %s33_s23 }
   0x4   :  { %15 = vsyncpa [#allocation5], 0  ;;  %s929_s24 = smov [#allocation6]   ;;  %s58_s28 = sshll.u32 %s1242_s3, 4  ;;  %s59_s28 = int_to_ptr.hbm [resolvable:$true] %s58_s28 }
   0x5   :  { %s35_s25 = sshll.u32 %s929_s24, 4  ;;  %s930_s29 = smov 384   ;;  %s36_s25 = int_to_ptr.vmem [resolvable:$true] %s35_s25 }
   0x6   :  { %s931_s30 = smov 24   ;;  %s932_s7 = smov [#allocation9]  }
   0x7   :  { %41 = dma.hbm_to_vmem [thread:$0]  %s34_s23, 1536, %s36_s25, [#allocation7], %s930_s29, %s930_s29, %s931_s30  }
   0x8   :  { %s60_s8 = sshll.u32 %s932_s7, 4  ;;  %s20_s11 = sshll.u32 %s1239_s0, 4  ;;  %s61_s8 = int_to_ptr.vmem [resolvable:$true] %s60_s8  ;;  %s21_s11 = int_to_ptr.hbm [resolvable:$true] %s20_s11 }
   0x9   :  { %63 = dma.hbm_to_vmem [thread:$0]  %s59_s28, 192, %s61_s8, [#allocation10]  }
   0xa   :  { %s933_s1 = smov [#allocation3]   ;;  %s47_s3 = sshll.u32 %s1241_s2, 4  ;;  %s48_s3 = int_to_ptr.hbm [resolvable:$true] %s47_s3 }
   0xb   :  { %s22_s12 = sshll.u32 %s933_s1, 4  ;;  %s934_s15 = smov 128   ;;  %s23_s12 = int_to_ptr.vmem [resolvable:$true] %s22_s12 }
   0xc   :  { %s935_s16 = smov 8   ;;  %s936_s17 = smov [#allocation8]  }
   0xd   :  { %28 = dma.hbm_to_vmem [thread:$0]  %s21_s11, 256, %s23_s12, [#allocation4], %s934_s15, %s934_s15, %s935_s16  }
   0xe   :  { %s49_s18 = sshll.u32 %s936_s17, 4  ;;  %s69_s20 = sshll.u32 %s1243_s4, 4  ;;  %s50_s18 = int_to_ptr.vmem [resolvable:$true] %s49_s18  ;;  %s70_s20 = int_to_ptr.hbm [resolvable:$true] %s69_s20 }
   0xf   :  { %52 = dma.hbm_to_vmem [thread:$0]  %s48_s3, 48, %s50_s18, [#allocation7]  }
  0x10   :  { %s79_s2 = sshll.u32 %s1244_s5, 4  ;;  %s937_s23 = smov [#allocation11]   ;;  %s80_s2 = int_to_ptr.hbm [resolvable:$true] %s79_s2 }
  0x11   :  { %s71_s24 = sshll.u32 %s937_s23, 4  ;;  %s938_s25 = smov [#allocation12]   ;;  %s72_s24 = int_to_ptr.vmem [resolvable:$true] %s71_s24 }
  0x12   :  { %74 = dma.hbm_to_vmem [thread:$0]  %s70_s20, 192, %s72_s24, [#allocation10]  }
  0x13   :  { %s81_s26 = sshll.u32 %s938_s25, 4  ;;  %s82_s26 = int_to_ptr.vmem [resolvable:$true] %s81_s26 }
  0x14   :  { %87 = dma.hbm_to_vmem [thread:$0]  %s80_s2, 6144, %s82_s26, [#allocation13], %s934_s15, %s934_s15, %s935_s16  }
  0x15   :  { %919 = dma.done.wait [#allocation4], 256  }
  0x16   :  { %920 = vsyncadd [#allocation4], 4294967040 }
  0x17   :  { %921 = dma.done.wait [#allocation7], 1584  }
  0x18   :  { %922 = vsyncadd [#allocation7], 4294965712 }
  0x19   :  { %923 = dma.done.wait [#allocation10], 384  }
  0x1a   :  { %924 = vsyncadd [#allocation10], 4294966912 }
  0x1b   :  { %925 = dma.done.wait [#allocation13], 6144  }
  0x1c   :  { %926 = vsyncadd [#allocation13], 4294961152  ;;  %v939_v0 = vmov 0.0   ;;  %v167_v1 = vld [vmem:[#allocation6 + $0x48] sm:$0xff]  ;;  %v164_v2 = vld [vmem:[#allocation6 + $0x30] sm:$0xff]  ;;  %vm170_vm0 = vcmask 261120   ;;  %v272_v60 = vlaneseq }
  0x1d   :  { %552 = vst [vmem:[#allocation2 + $0x10] sm:$0xff] %v939_v0  ;;  %189 = vmatpush.msra.mxu2 %v167_v1  ;;  %v1005_v3 = vld [vmem:[#allocation3] sm:$0xff]  ;;  %v161_v4 = vld [vmem:[#allocation6 + $0x18] sm:$0xff]  ;;  %v158_v10 = vld [vmem:[#allocation6] sm:$0xff]  ;;  %s940_s4 = smov 96   ;;  %s941_s5 = smov 64  }
  0x1e   :  { %555 = vst [vmem:[#allocation2 + $0x28] sm:$0xff] %v939_v0  ;;  %v705_v5 = vmul.f32 -1.442695, %v1005_v3  ;;  %v168_v6 = vld [vmem:[#allocation6 + $0x50] sm:$0xff]  ;;  %v1008_v7 = vld [vmem:[#allocation3 + $0x8] sm:$0xff]  ;;  %v162_v11 = vld [vmem:[#allocation6 + $0x20] sm:$0xff] }
  0x1f   :  { %190 = vmatpush.msra.mxu2 %v164_v2  ;;  %212 = vmatpush.msra.mxu1 %v168_v6  ;;  %v706_v8 = vmul.f32 -1.442695, %v1008_v7  ;;  %v165_v9 = vld [vmem:[#allocation6 + $0x38] sm:$0xff]  ;;  %v159_v13 = vld [vmem:[#allocation6 + $0x8] sm:$0xff]  ;;  %v166_v14 = vld [vmem:[#allocation6 + $0x40] sm:$0xff]  ;;  %v1059_v61 = vand.u32 127, %v272_v60 }
  0x20   :  { %743 = vpow2.f32 %v705_v5  ;;  %v169_v12 = vld [vmem:[#allocation6 + $0x58] sm:$0xff]  ;;  %v163_v16 = vld [vmem:[#allocation6 + $0x28] sm:$0xff]  ;;  %v160_v20 = vld [vmem:[#allocation6 + $0x10] sm:$0xff]  ;;  %s942_s27 = smov 32   ;;  %s943_s28 = smov [#allocation14]  }
  0x21   :  { %191 = vmatpush.msra.mxu2 %v161_v4  ;;  %745 = vpow2.f32 %v706_v8  ;;  %213 = vmatpush.msra.mxu1 %v165_v9  ;;  %v246_v43 = vld [vmem:[#allocation8] sm:$0x7]  ;;  %vm274_vm9 = vcmp.lt.s32.totalorder %v1059_v61, 96  ;;  %s687_s29 = sshll.u32 %s943_s28, 4  ;;  %s689_s8 = sshll.u32 %s1245_s6, 4  ;;  %s688_s29 = int_to_ptr.vmem [resolvable:$true] %s687_s29  ;;  %s690_s8 = int_to_ptr.hbm [resolvable:$true] %s689_s8 }
  0x22   :  { %v248_v45 = vperm.slane %v246_v43, 0  ;;  %v249_v48 = vperm.slane %v246_v43, 1  ;;  %v250_v53 = vperm.slane %v246_v43, 2 }
  0x23   :  { %192 = vmatpush.msra.mxu2 %v158_v10  ;;  %214 = vmatpush.msra.mxu1 %v162_v11 }
  0x24   :  { %707 = vmatmul.msk.f32.vlgmr.msra.gmra.mxu2 %vm170_vm0, %v1005_v3 }
  0x25   :  { %235 = vmatpush.msrb.mxu2 %v169_v12  ;;  %215 = vmatpush.msra.mxu1 %v159_v13 }
  0x26   :  { %v744_v15 = vpop.eup %743  ;;  %709 = vmatmul.msk.f32.vlgmr.msra.gmra.mxu1 %vm170_vm0, %v1005_v3 }
  0x27   :  { %v746_v17 = vpop.eup %745  ;;  %v124_v18 = vadd.f32 1.0, %v744_v15  ;;  %236 = vmatpush.msrb.mxu2 %v166_v14 }
  0x28   :  { %v125_v19 = vadd.f32 1.0, %v746_v17 }
  0x29   :  { %747 = vrcp.f32 %v124_v18  ;;  %237 = vmatpush.msrb.mxu2 %v163_v16  ;;  %vm131_vm1 = vweird.f32 %v124_v18  ;;  %v137_v24 = vand.u32 2147483648, %v124_v18  ;;  %v135_v27 = vand.u32 2147483647, %v124_v18 }
  0x2a   :  { %749 = vrcp.f32 %v125_v19  ;;  %v152_v28 = vand.u32 2147483648, %v125_v19  ;;  %vm146_vm3 = vweird.f32 %v125_v19  ;;  %v150_v30 = vand.u32 2147483647, %v125_v19 }
  0x2b   :  { %238 = vmatpush.msrb.mxu2 %v160_v20  ;;  %v138_v32 = vor.u32 1.1754944e-38, %v137_v24  ;;  %vm136_vm6 = vcmp.eq.f32.partialorder %v135_v27, 8.507059e+37  ;;  %v342_v20 = vld [vmem:[#allocation9] ss:$4 sm:$0x7] }
  0x2c   :  { %708 = vmatmul.msk.f32.gmra.mxu2 %vm170_vm0, %v1008_v7  ;;  %v153_v35 = vor.u32 1.1754944e-38, %v152_v28  ;;  %vm151_vm8 = vcmp.eq.f32.partialorder %v150_v30, 8.507059e+37 }
  0x2e   :  { %710 = vmatmul.msk.f32.gmra.mxu1 %vm170_vm0, %v1008_v7 }
  0x2f   :  { %v748_v21 = vpop.eup %747 }
  0x30   :  { %v750_v22 = vpop.eup %749  ;;  %v127_v23 = vmul.f32 %v748_v21, %v124_v18  ;;  %vm132_vm2 = vweird.f32 %v748_v21 }
  0x31   :  { %v142_v25 = vmul.f32 %v750_v22, %v125_v19  ;;  %vm147_vm4 = vweird.f32 %v750_v22  ;;  %vm133_vm5 = vmor %vm131_vm1, %vm132_vm2 }
  0x32   :  { %v128_v26 = vsub.f32 1.0, %v127_v23  ;;  %vm148_vm7 = vmor %vm146_vm3, %vm147_vm4  ;;  %v344_v23 = vperm.slane %v342_v20, 0 }
  0x33   :  { %v143_v29 = vsub.f32 1.0, %v142_v25 }
  0x34   :  { %v129_v31 = vmul.f32 %v748_v21, %v128_v26  ;;  %711 = vmatmul.msk.f32.vlgmr.msrb.gmra.mxu2 %vm170_vm0, %v1005_v3 }
  0x35   :  { %v144_v33 = vmul.f32 %v750_v22, %v143_v29 }
  0x36   :  { %v130_v34 = vadd.f32 %v748_v21, %v129_v31 }
  0x37   :  { %v145_v36 = vadd.f32 %v750_v22, %v144_v33  ;;  %v345_v33 = vperm.slane %v342_v20, 1 }
  0x38   :  { %v134_v37 = vsel %vm133_vm5, %v748_v21, %v130_v34 }
  0x39   :  { %v139_v38 = vsel %vm136_vm6, %v138_v32, %v134_v37  ;;  %v149_v39 = vsel %vm148_vm7, %v750_v22, %v145_v36  ;;  %v362_v22 = vld [vmem:[#allocation11] ss:$4 sm:$0x7] }
  0x3a   :  { %v156_v40 = vmul.f32 %v139_v38, %v1005_v3  ;;  %v154_v41 = vsel %vm151_vm8, %v153_v35, %v149_v39  ;;  %v364_v25 = vperm.slane %v362_v22, 0  ;;  %v346_v35 = vperm.slane %v342_v20, 2 }
  0x3b   :  { %v157_v42 = vmul.f32 %v154_v41, %v1008_v7  ;;  %v366_v37 = vperm.slane %v362_v22, 2  ;;  %v365_v38 = vperm.slane %v362_v22, 1 }
  0x3c   :  { %556 = vst.msk [vmem:[#allocation2 + $0x10] sm:$0xff] %vm170_vm0, %v156_v40  ;;  %712 = vmatmul.msk.f32.gmra.mxu2 %vm170_vm0, %v1008_v7 }
  0x3d   :  { %557 = vst.msk [vmem:[#allocation2 + $0x28] sm:$0xff] %vm170_vm0, %v157_v42 }
  0xa3   :  { %v217_v44 = vpop.f32.mrf.mxu1 }
  0xa4   :  { %v1033_v51 = vsub.f32 %v217_v44, %v249_v48 }
  0xa6   :  { %vm282_vm13 = vcmp.ge.f32.partialorder %v1033_v51, 0.0  ;;  %v351_v43 = vmul.f32 %v345_v33, %v1033_v51 }
  0xa7   :  { %v194_v46 = vpop.f32.mrf.mxu2 }
  0xa8   :  { %v1027_v47 = vsub.f32 %v194_v46, %v248_v45 }
  0xaa   :  { %260 = vrot.lane.b32.xlu0 %v1027_v47, %s940_s4  ;;  %vm281_vm11 = vcmp.ge.f32.partialorder %v1027_v47, 0.0  ;;  %v350_v30 = vmul.f32 %v344_v23, %v1027_v47 }
  0xab   :  { %v220_v49 = vpop.f32.mrf.mxu1 }
  0xac   :  { %v1031_v50 = vsub.f32 %v220_v49, %v249_v48 }
  0xae   :  { %266 = vrot.lane.b32.xlu2 %v1031_v50, %s940_s4  ;;  %vm285_vm3 = vcmp.ge.f32.partialorder %v1031_v50, 0.0 }
  0xaf   :  { %v197_v52 = vpop.f32.mrf.mxu2 }
  0xb0   :  { %v1045_v57 = vsub.f32 %v197_v52, %v248_v45 }
  0xb2   :  { %264 = vrot.lane.b32.xlu0 %v1033_v51, %s940_s4  ;;  %vm284_vm6 = vcmp.ge.f32.partialorder %v1045_v57, 0.0  ;;  %v353_v45 = vmul.f32 %v344_v23, %v1045_v57 }
  0xb7   :  { %v240_v54 = vpop.f32.mrf.mxu2 }
  0xb8   :  { %v1039_v55 = vsub.f32 %v240_v54, %v250_v53 }
  0xba   :  { %305 = vrot.lane.b32.xlu0 %v1027_v47, %s941_s5  ;;  %268 = vrot.lane.b32.xlu1 %v1039_v55, %s940_s4  ;;  %vm283_vm2 = vcmp.ge.f32.partialorder %v1039_v55, 0.0  ;;  %v352_v44 = vmul.f32 %v346_v35, %v1039_v55 }
  0xbf   :  { %v243_v56 = vpop.f32.mrf.mxu2 }
  0xc0   :  { %v1047_v58 = vsub.f32 %v243_v56, %v250_v53 }
  0xc2   :  { %262 = vrot.lane.b32.xlu1 %v1045_v57, %s940_s4  ;;  %270 = vrot.lane.b32.xlu2 %v1047_v58, %s940_s4 }
  0xca   :  { %309 = vrot.lane.b32.xlu1 %v1033_v51, %s941_s5  ;;  %313 = vrot.lane.b32.xlu2 %v1039_v55, %s941_s5 }
  0xd2   :  { %307 = vrot.lane.b32.xlu2 %v1045_v57, %s941_s5 }
 0x108   :  { %v267_v62 = vpop.permute.xlu2 %266 }
 0x11c   :  { %v261_v59 = vpop.permute.xlu0 %260  ;;  %v271_v3 = vpop.permute.xlu2 %270 }
 0x11d   :  { %v276_v6 = vsel %vm274_vm9, %v267_v62, %v271_v3 }
 0x11e   :  { %vm291_vm1 = vcmp.lt.f32.partialorder %v276_v6, 0.0 }
 0x11f   :  { %vm297_vm5 = vmand %vm285_vm3, %vm291_vm1 }
 0x120   :  { %v1089_v15 = vsel %vm297_vm5, 1.0, %v939_v0 }
 0x124   :  { %v265_v63 = vpop.permute.xlu0 %264 }
 0x125   :  { %v277_v1 = vsel %vm274_vm9, %v261_v59, %v265_v63 }
 0x126   :  { %vm287_vm10 = vcmp.lt.f32.partialorder %v277_v1, 0.0 }
 0x127   :  { %vm293_vm12 = vmand %vm281_vm11, %vm287_vm10  ;;  %vm286_vm10 = vcmp.ge.f32.partialorder %v1047_v58, 0.0 }
 0x128   :  { %v299_v7 = vsel %vm293_vm12, 1.0, %v939_v0 }
 0x129   :  { %v356_v34 = vmul.f32 %v350_v30, %v299_v7 }
 0x12c   :  { %v269_v2 = vpop.permute.xlu1 %268  ;;  %v306_v19 = vpop.permute.xlu0 %305 }
 0x12d   :  { %v275_v4 = vsel %vm274_vm9, %v265_v63, %v269_v2  ;;  %v279_v5 = vsel %vm274_vm9, %v269_v2, %v261_v59 }
 0x12e   :  { %vm288_vm14 = vcmp.lt.f32.partialorder %v275_v4, 0.0  ;;  %vm289_vm0 = vcmp.lt.f32.partialorder %v279_v5, 0.0 }
 0x12f   :  { %vm294_vm15 = vmand %vm282_vm13, %vm288_vm14  ;;  %vm317_vm13 = vcmp.lt.s32.totalorder %v1059_v61, 64  ;;  %vm400_vm14 = vcmp.lt.s32.totalorder %v1059_v61, 32 }
 0x130   :  { %v1074_v8 = vsel %vm294_vm15, 1.0, %v939_v0  ;;  %vm295_vm4 = vmand %vm283_vm2, %vm289_vm0 }
 0x131   :  { %v728_v9 = vpack.i.bf16 %v1074_v8, %v299_v7  ;;  %v301_v13 = vsel %vm295_vm4, 1.0, %v939_v0  ;;  %v357_v59 = vmul.f32 %v351_v43, %v1074_v8 }
 0x132   :  { %v358_v63 = vmul.f32 %v352_v44, %v301_v13 }
 0x133   :  { %729 = vrot.lane.b32.xlu0 %v728_v9, %s940_s4 }
 0x134   :  { %v263_v10 = vpop.permute.xlu1 %262 }
 0x135   :  { %v278_v11 = vsel %vm274_vm9, %v263_v10, %v267_v62  ;;  %v280_v12 = vsel %vm274_vm9, %v271_v3, %v263_v10 }
 0x136   :  { %vm290_vm7 = vcmp.lt.f32.partialorder %v278_v11, 0.0  ;;  %vm292_vm8 = vcmp.lt.f32.partialorder %v280_v12, 0.0 }
 0x137   :  { %vm296_vm11 = vmand %vm284_vm6, %vm290_vm7 }
 0x138   :  { %vm298_vm12 = vmand %vm286_vm10, %vm292_vm8  ;;  %v302_v14 = vsel %vm296_vm11, 1.0, %v939_v0 }
 0x139   :  { %v1092_v16 = vsel %vm298_vm12, 1.0, %v939_v0  ;;  %v733_v17 = vpack.i.bf16 %v302_v14, %v301_v13  ;;  %v314_v0 = vpop.permute.xlu2 %313  ;;  %v359_v4 = vmul.f32 %v353_v45, %v302_v14 }
 0x13a   :  { %v738_v18 = vpack.i.bf16 %v1092_v16, %v1089_v15  ;;  %v322_v41 = vsel %vm317_vm13, %v314_v0, %v306_v19 }
 0x13b   :  { %311 = vrot.lane.b32.xlu0 %v1031_v50, %s941_s5  ;;  %734 = vrot.lane.b32.xlu1 %v733_v17, %s940_s4  ;;  %v372_v56 = vmul.f32 %v366_v37, %v322_v41  ;;  %v354_v17 = vmul.f32 %v345_v33, %v1031_v50  ;;  %v447_v33 = vld [vmem:[#allocation11 + $0x1] ss:$4 sm:$0x7] }
 0x13c   :  { %739 = vrot.lane.b32.xlu2 %v738_v18, %s940_s4  ;;  %v310_v21 = vpop.permute.xlu1 %309  ;;  %v355_v18 = vmul.f32 %v346_v35, %v1047_v58 }
 0x13d   :  { %v320_v26 = vsel %vm317_vm13, %v306_v19, %v310_v21  ;;  %v318_v42 = vsel %vm317_vm13, %v310_v21, %v314_v0  ;;  %v360_v22 = vmul.f32 %v354_v17, %v1089_v15  ;;  %v426_v15 = vld [vmem:[#allocation9 + $0x1] ss:$4 sm:$0x7] }
 0x13e   :  { %v370_v31 = vmul.f32 %v364_v25, %v320_v26  ;;  %v371_v60 = vmul.f32 %v365_v38, %v318_v42  ;;  %v361_v23 = vmul.f32 %v355_v18, %v1092_v16  ;;  %v451_v16 = vperm.slane %v447_v33, 2 }
 0x13f   :  { %v428_v45 = vperm.slane %v426_v15, 0 }
 0x141   :  { %v308_v24 = vpop.permute.xlu2 %307 }
 0x143   :  { %388 = vrot.lane.b32.xlu0 %v1027_v47, %s942_s27  ;;  %315 = vrot.lane.b32.xlu1 %v1047_v58, %s941_s5 }
 0x144   :  { %396 = vrot.lane.b32.xlu2 %v1039_v55, %s942_s27 }
 0x14b   :  { %390 = vrot.lane.b32.xlu0 %v1045_v57, %s942_s27  ;;  %392 = vrot.lane.b32.xlu1 %v1033_v51, %s942_s27 }
 0x14c   :  { %398 = vrot.lane.b32.xlu2 %v1047_v58, %s942_s27 }
 0x153   :  { %394 = vrot.lane.b32.xlu1 %v1031_v50, %s942_s27 }
 0x196   :  { %v740_v39 = vpop.permute.xlu2 %739 }
 0x197   :  { %v741_v49 = vunpack.i.l.bf16 %v740_v39  ;;  %v742_v11 = vunpack.i.h.bf16 %v740_v39 }
 0x199   :  { %v337_v20 = vsel %vm274_vm9, %v741_v49, %v742_v11 }
 0x1a5   :  { %v730_v27 = vpop.permute.xlu0 %729 }
 0x1a6   :  { %v732_v28 = vunpack.i.h.bf16 %v730_v27  ;;  %v731_v29 = vunpack.i.l.bf16 %v730_v27 }
 0x1a8   :  { %v338_v32 = vsel %vm274_vm9, %v731_v29, %v732_v28 }
 0x1a9   :  { %v376_v36 = vmul.f32 %v370_v31, %v338_v32 }
 0x1ab   :  { %v1114_v40 = vadd.f32 %v376_v36, %v356_v34  ;;  %v430_v34 = vperm.slane %v426_v15, 2 }
 0x1ad   :  { %v312_v46 = vpop.permute.xlu0 %311  ;;  %407 = vrot.lane.b32.xlu0 %v1114_v40, %s940_s4  ;;  %v735_v48 = vpop.permute.xlu1 %734  ;;  %v436_v41 = vmul.f32 %v430_v34, %v1039_v55 }
 0x1ae   :  { %v321_v52 = vsel %vm317_vm13, %v308_v24, %v312_v46  ;;  %v737_v53 = vunpack.i.h.bf16 %v735_v48  ;;  %v736_v54 = vunpack.i.l.bf16 %v735_v48  ;;  %v450_v48 = vperm.slane %v447_v33, 1 }
 0x1af   :  { %v373_v62 = vmul.f32 %v364_v25, %v321_v52  ;;  %v429_v52 = vperm.slane %v426_v15, 1 }
 0x1b0   :  { %v336_v1 = vsel %vm274_vm9, %v732_v28, %v736_v54  ;;  %v339_v2 = vsel %vm274_vm9, %v737_v53, %v741_v49  ;;  %v340_v3 = vsel %vm274_vm9, %v736_v54, %v731_v29  ;;  %v341_v21 = vsel %vm274_vm9, %v742_v11, %v737_v53  ;;  %v397_v28 = vpop.permute.xlu2 %396 }
 0x1b1   :  { %v377_v5 = vmul.f32 %v371_v60, %v336_v1  ;;  %v378_v6 = vmul.f32 %v372_v56, %v340_v3  ;;  %v379_v7 = vmul.f32 %v373_v62, %v339_v2  ;;  %v435_v1 = vmul.f32 %v429_v52, %v1033_v51 }
 0x1b2   :  { %v439_v2 = vmul.f32 %v430_v34, %v1047_v58  ;;  %v595_v34 = vld [vmem:[#allocation12 + $0xf8] sm:$0xff] }
 0x1b3   :  { %v1134_v9 = vadd.f32 %v377_v5, %v357_v59  ;;  %v384_v10 = vadd.f32 %v378_v6, %v358_v63  ;;  %v1136_v8 = vadd.f32 %v379_v7, %v359_v4  ;;  %v434_v59 = vmul.f32 %v428_v45, %v1027_v47  ;;  %635 = vmatpush.msra.mxu0 %v595_v34 }
 0x1b5   :  { %v316_v12 = vpop.permute.xlu1 %315  ;;  %411 = vrot.lane.b32.xlu1 %v1134_v9, %s940_s4  ;;  %415 = vrot.lane.b32.xlu2 %v384_v10, %s940_s4  ;;  %v389_v29 = vpop.permute.xlu0 %388  ;;  %v442_v44 = vmul.f32 %v436_v41, %v384_v10  ;;  %v440_v10 = vmul.f32 %v434_v59, %v1114_v40  ;;  %v610_v41 = vld [vmem:[#allocation12 + $0x170] sm:$0xff]  ;;  %v571_v59 = vld [vmem:[#allocation12 + $0x38] sm:$0xff] }
 0x1b6   :  { %v319_v13 = vsel %vm317_vm13, %v312_v46, %v316_v12  ;;  %v323_v14 = vsel %vm317_vm13, %v316_v12, %v308_v24  ;;  %409 = vrot.lane.b32.xlu0 %v1136_v8, %s940_s4  ;;  %v405_v35 = vsel %vm400_vm14, %v397_v28, %v389_v29  ;;  %v449_v46 = vperm.slane %v447_v33, 0 }
 0x1b7   :  { %v374_v0 = vmul.f32 %v365_v38, %v319_v13  ;;  %v375_v19 = vmul.f32 %v366_v37, %v323_v14  ;;  %v457_v37 = vmul.f32 %v451_v16, %v405_v35  ;;  %v441_v14 = vmul.f32 %v435_v1, %v1134_v9  ;;  %v578_v35 = vld [vmem:[#allocation12 + $0x70] sm:$0xff] }
 0x1b8   :  { %v399_v31 = vpop.permute.xlu2 %398  ;;  %v606_v1 = vld [vmem:[#allocation12 + $0x150] sm:$0xff] }
 0x1b9   :  { %v380_v24 = vmul.f32 %v374_v0, %v337_v20  ;;  %v381_v25 = vmul.f32 %v375_v19, %v341_v21 }
 0x1bb   :  { %v1155_v26 = vadd.f32 %v380_v24, %v360_v22  ;;  %v387_v27 = vadd.f32 %v381_v25, %v361_v23  ;;  %v437_v24 = vmul.f32 %v428_v45, %v1045_v57  ;;  %v438_v25 = vmul.f32 %v429_v52, %v1031_v50  ;;  %v574_v45 = vld [vmem:[#allocation12 + $0x50] sm:$0xff]  ;;  %v589_v52 = vld [vmem:[#allocation12 + $0xc8] sm:$0xff] }
 0x1bd   :  { %413 = vrot.lane.b32.xlu1 %v1155_v26, %s940_s4  ;;  %417 = vrot.lane.b32.xlu2 %v387_v27, %s940_s4  ;;  %v393_v30 = vpop.permute.xlu1 %392  ;;  %v391_v32 = vpop.permute.xlu0 %390  ;;  %v445_v18 = vmul.f32 %v439_v2, %v387_v27  ;;  %v569_v2 = vld [vmem:[#allocation12 + $0x28] sm:$0xff] }
 0x1be   :  { %v401_v53 = vsel %vm400_vm14, %v393_v30, %v397_v28  ;;  %v403_v54 = vsel %vm400_vm14, %v389_v29, %v393_v30  ;;  %v406_v56 = vsel %vm400_vm14, %v399_v31, %v391_v32 }
 0x1bf   :  { %v455_v60 = vmul.f32 %v449_v46, %v403_v54  ;;  %v456_v62 = vmul.f32 %v450_v48, %v401_v53  ;;  %v460_v3 = vmul.f32 %v451_v16, %v406_v56  ;;  %v579_v16 = vld [vmem:[#allocation12 + $0x78] sm:$0xff]  ;;  %v572_v54 = vld [vmem:[#allocation12 + $0x40] sm:$0xff] }
 0x1c0   :  { %612 = vmatpush.msra.mxu3 %v579_v16  ;;  %v607_v53 = vld [vmem:[#allocation12 + $0x158] sm:$0xff]  ;;  %v588_v56 = vld [vmem:[#allocation12 + $0xc0] sm:$0xff] }
 0x1c2   :  { %613 = vmatpush.msra.mxu3 %v578_v35 }
 0x1c5   :  { %v395_v38 = vpop.permute.xlu1 %394 }
 0x1c6   :  { %v402_v20 = vsel %vm400_vm14, %v395_v38, %v399_v31  ;;  %v404_v21 = vsel %vm400_vm14, %v391_v32, %v395_v38  ;;  %v443_v31 = vmul.f32 %v437_v24, %v1136_v8  ;;  %v444_v32 = vmul.f32 %v438_v25, %v1155_v26  ;;  %v593_v8 = vld [vmem:[#allocation12 + $0xe8] sm:$0xff]  ;;  %v576_v26 = vld [vmem:[#allocation12 + $0x60] sm:$0xff]  ;;  %v598_v24 = vld [vmem:[#allocation12 + $0x110] sm:$0xff] }
 0x1c7   :  { %v458_v9 = vmul.f32 %v449_v46, %v404_v21  ;;  %v459_v22 = vmul.f32 %v450_v48, %v402_v20  ;;  %v592_v38 = vld [vmem:[#allocation12 + $0xe0] sm:$0xff]  ;;  %v590_v46 = vld [vmem:[#allocation12 + $0xd0] sm:$0xff]  ;;  %v581_v20 = vld [vmem:[#allocation12 + $0x88] sm:$0xff] }
 0x1c8   :  { %v608_v48 = vld [vmem:[#allocation12 + $0x160] sm:$0xff]  ;;  %v601_v21 = vld [vmem:[#allocation12 + $0x128] sm:$0xff] }
 0x1c9   :  { %v597_v25 = vld [vmem:[#allocation12 + $0x108] sm:$0xff] }
 0x20f   :  { %v416_v36 = vpop.permute.xlu2 %415 }
 0x217   :  { %v418_v4 = vpop.permute.xlu2 %417 }
 0x21f   :  { %v408_v39 = vpop.permute.xlu0 %407 }
 0x220   :  { %v423_v42 = vsel %vm274_vm9, %v416_v36, %v408_v39 }
 0x221   :  { %v463_v43 = vmul.f32 %v457_v37, %v423_v42  ;;  %v577_v37 = vld [vmem:[#allocation12 + $0x68] sm:$0xff]  ;;  %v575_v42 = vld [vmem:[#allocation12 + $0x58] sm:$0xff] }
 0x222   :  { %614 = vmatpush.msra.mxu3 %v577_v37 }
 0x223   :  { %v469_v49 = vadd.f32 %v463_v43, %v442_v44  ;;  %v591_v43 = vld [vmem:[#allocation12 + $0xd8] sm:$0xff]  ;;  %v609_v44 = vld [vmem:[#allocation12 + $0x168] sm:$0xff] }
 0x224   :  { %615 = vmatpush.msra.mxu3 %v576_v26 }
 0x225   :  { %481 = vrot.lane.b32.xlu2 %v469_v49, %s940_s4  ;;  %v573_v49 = vld [vmem:[#allocation12 + $0x48] sm:$0xff] }
 0x226   :  { %616 = vmatpush.msra.mxu3 %v575_v42 }
 0x227   :  { %v412_v63 = vpop.permute.xlu1 %411 }
 0x228   :  { %v419_v5 = vsel %vm274_vm9, %v412_v63, %v416_v36  ;;  %v421_v6 = vsel %vm274_vm9, %v408_v39, %v412_v63  ;;  %v410_v7 = vpop.permute.xlu0 %409  ;;  %v594_v36 = vld [vmem:[#allocation12 + $0xf0] sm:$0xff]  ;;  %v611_v39 = vld [vmem:[#allocation12 + $0x178] sm:$0xff]  ;;  %617 = vmatpush.msra.mxu3 %v574_v45 }
 0x229   :  { %v461_v11 = vmul.f32 %v455_v60, %v421_v6  ;;  %v462_v12 = vmul.f32 %v456_v62, %v419_v5  ;;  %v424_v13 = vsel %vm274_vm9, %v418_v4, %v410_v7  ;;  %636 = vmatpush.msra.mxu0 %v594_v36  ;;  %658 = vmatpush.msrb.mxu1 %v611_v39  ;;  %v587_v60 = vld [vmem:[#allocation12 + $0xb8] sm:$0xff]  ;;  %v570_v62 = vld [vmem:[#allocation12 + $0x30] sm:$0xff]  ;;  %v568_v5 = vld [vmem:[#allocation12 + $0x20] sm:$0xff] }
 0x22a   :  { %v466_v17 = vmul.f32 %v460_v3, %v424_v13  ;;  %618 = vmatpush.msra.mxu3 %v573_v49  ;;  %v586_v63 = vld [vmem:[#allocation12 + $0xb0] sm:$0xff]  ;;  %v585_v3 = vld [vmem:[#allocation12 + $0xa8] sm:$0xff]  ;;  %v584_v6 = vld [vmem:[#allocation12 + $0xa0] sm:$0xff] }
 0x22b   :  { %v1184_v0 = vadd.f32 %v461_v11, %v440_v10  ;;  %v1186_v19 = vadd.f32 %v462_v12, %v441_v14  ;;  %637 = vmatpush.msra.mxu0 %v593_v8  ;;  %659 = vmatpush.msrb.mxu1 %v610_v41  ;;  %v567_v10 = vld [vmem:[#allocation12 + $0x18] sm:$0xff]  ;;  %v566_v13 = vld [vmem:[#allocation12 + $0x10] sm:$0xff] }
 0x22c   :  { %v472_v40 = vadd.f32 %v466_v17, %v445_v18  ;;  %619 = vmatpush.msra.mxu3 %v572_v54  ;;  %v583_v11 = vld [vmem:[#allocation12 + $0x98] sm:$0xff]  ;;  %v582_v14 = vld [vmem:[#allocation12 + $0x90] sm:$0xff]  ;;  %v565_v18 = vld [vmem:[#allocation12 + $0x8] sm:$0xff] }
 0x22d   :  { %473 = vrot.lane.b32.xlu0 %v1184_v0, %s940_s4  ;;  %477 = vrot.lane.b32.xlu1 %v1186_v19, %s940_s4  ;;  %v603_v12 = vld [vmem:[#allocation12 + $0x138] sm:$0xff]  ;;  %v602_v17 = vld [vmem:[#allocation12 + $0x130] sm:$0xff] }
 0x22e   :  { %483 = vrot.lane.b32.xlu2 %v472_v40, %s940_s4  ;;  %638 = vmatpush.msra.mxu0 %v592_v38  ;;  %v564_v40 = vld [vmem:[#allocation12] sm:$0xff] }
 0x22f   :  { %v414_v23 = vpop.permute.xlu1 %413  ;;  %660 = vmatpush.msrb.mxu1 %v609_v44  ;;  %620 = vmatpush.msra.mxu3 %v571_v59 }
 0x230   :  { %v420_v27 = vsel %vm274_vm9, %v414_v23, %v418_v4  ;;  %v422_v28 = vsel %vm274_vm9, %v410_v7, %v414_v23  ;;  %639 = vmatpush.msra.mxu0 %v591_v43  ;;  %v605_v4 = vld [vmem:[#allocation12 + $0x148] sm:$0xff]  ;;  %v604_v7 = vld [vmem:[#allocation12 + $0x140] sm:$0xff]  ;;  %v599_v23 = vld [vmem:[#allocation12 + $0x118] sm:$0xff] }
 0x231   :  { %v464_v29 = vmul.f32 %v458_v9, %v422_v28  ;;  %v465_v30 = vmul.f32 %v459_v22, %v420_v27  ;;  %661 = vmatpush.msrb.mxu1 %v608_v48  ;;  %621 = vmatpush.msra.mxu3 %v570_v62  ;;  %v580_v9 = vld [vmem:[#allocation12 + $0x80] sm:$0xff]  ;;  %v560_v28 = vld [vmem:[#allocation2 + $0x10] sm:$0xff] }
 0x232   :  { %640 = vmatpush.msra.mxu0 %v590_v46  ;;  %v600_v22 = vld [vmem:[#allocation12 + $0x120] sm:$0xff] }
 0x233   :  { %v1205_v33 = vadd.f32 %v464_v29, %v443_v31  ;;  %v1207_v15 = vadd.f32 %v465_v30, %v444_v32  ;;  %662 = vmatpush.msrb.mxu1 %v607_v53  ;;  %622 = vmatpush.msra.mxu3 %v569_v2  ;;  %v596_v27 = vld [vmem:[#allocation12 + $0x100] sm:$0xff]  ;;  %v563_v29 = vld [vmem:[#allocation2 + $0x28] sm:$0xff]  ;;  %v513_v31 = vld [vmem:[#allocation11 + $0x2] ss:$4 sm:$0x7] }
 0x234   :  { %641 = vmatpush.msra.mxu0 %v589_v52  ;;  %v492_v30 = vld [vmem:[#allocation9 + $0x2] ss:$4 sm:$0x7]  ;;  %v515_v34 = vperm.slane %v513_v31, 0  ;;  %v516_v35 = vperm.slane %v513_v31, 1 }
 0x235   :  { %475 = vrot.lane.b32.xlu0 %v1205_v33, %s940_s4  ;;  %479 = vrot.lane.b32.xlu1 %v1207_v15, %s940_s4  ;;  %v494_v32 = vperm.slane %v492_v30, 0  ;;  %v495_v16 = vperm.slane %v492_v30, 1 }
 0x236   :  { %642 = vmatpush.msra.mxu0 %v588_v56  ;;  %663 = vmatpush.msrb.mxu1 %v606_v1  ;;  %v521_v38 = vmul.f32 %v515_v34, %v1033_v51  ;;  %v522_v39 = vmul.f32 %v516_v35, %v1039_v55  ;;  %v524_v54 = vmul.f32 %v515_v34, %v1031_v50 }
 0x237   :  { %623 = vmatpush.msra.mxu3 %v568_v5  ;;  %v500_v37 = vmul.f32 %v494_v32, %v1027_v47  ;;  %v501_v8 = vmul.f32 %v495_v16, %v1033_v51  ;;  %v503_v55 = vmul.f32 %v494_v32, %v1045_v57  ;;  %v504_v52 = vmul.f32 %v495_v16, %v1031_v50 }
 0x238   :  { %643 = vmatpush.msra.mxu0 %v587_v60  ;;  %664 = vmatpush.msrb.mxu1 %v605_v4  ;;  %v525_v56 = vmul.f32 %v516_v35, %v1047_v58 }
 0x239   :  { %624 = vmatpush.msra.mxu3 %v567_v10  ;;  %v506_v44 = vmul.f32 %v500_v37, %v1184_v0  ;;  %v507_v45 = vmul.f32 %v501_v8, %v1186_v19  ;;  %v509_v60 = vmul.f32 %v503_v55, %v1205_v33  ;;  %v510_v62 = vmul.f32 %v504_v52, %v1207_v15 }
 0x23a   :  { %644 = vmatpush.msra.mxu0 %v586_v63  ;;  %665 = vmatpush.msrb.mxu1 %v604_v7 }
 0x23b   :  { %625 = vmatpush.msra.mxu3 %v566_v13 }
 0x23c   :  { %645 = vmatpush.msra.mxu0 %v585_v3  ;;  %666 = vmatpush.msrb.mxu1 %v603_v12 }
 0x23d   :  { %626 = vmatpush.msra.mxu3 %v565_v18 }
 0x23e   :  { %646 = vmatpush.msra.mxu0 %v584_v6  ;;  %667 = vmatpush.msrb.mxu1 %v602_v17 }
 0x23f   :  { %627 = vmatpush.msra.mxu3 %v564_v40 }
 0x240   :  { %647 = vmatpush.msra.mxu0 %v583_v11  ;;  %668 = vmatpush.msrb.mxu1 %v601_v21 }
 0x242   :  { %648 = vmatpush.msra.mxu0 %v582_v14  ;;  %669 = vmatpush.msrb.mxu1 %v600_v22 }
 0x244   :  { %649 = vmatpush.msra.mxu0 %v581_v20  ;;  %670 = vmatpush.msrb.mxu1 %v599_v23 }
 0x246   :  { %650 = vmatpush.msra.mxu0 %v580_v9  ;;  %671 = vmatpush.msrb.mxu1 %v598_v24 }
 0x248   :  { %672 = vmatpush.msrb.mxu1 %v597_v25 }
 0x24a   :  { %673 = vmatpush.msrb.mxu1 %v596_v27 }
 0x24b   :  { %674 = vmatmul.f32.vlgmr.msrb.gmra.mxu1 %v560_v28 }
 0x253   :  { %677 = vmatmul.f32.gmra.mxu1 %v563_v29 }
 0x27f   :  { %v482_v36 = vpop.permute.xlu2 %481 }
 0x288   :  { %v484_v51 = vpop.permute.xlu2 %483 }
 0x29f   :  { %v474_v26 = vpop.permute.xlu0 %473  ;;  %v478_v41 = vpop.permute.xlu1 %477 }
 0x2a0   :  { %v485_v42 = vsel %vm274_vm9, %v478_v41, %v482_v36  ;;  %v487_v43 = vsel %vm274_vm9, %v474_v26, %v478_v41 }
 0x2a1   :  { %v527_v46 = vmul.f32 %v521_v38, %v487_v43  ;;  %v528_v47 = vmul.f32 %v522_v39, %v485_v42 }
 0x2a3   :  { %v533_v48 = vadd.f32 %v527_v46, %v506_v44  ;;  %v534_v49 = vadd.f32 %v528_v47, %v507_v45 }
 0x2a5   :  { %628 = vmatmul.f32.vlgmr.msra.gmra.mxu3 %v533_v48  ;;  %651 = vmatmul.f32.vlgmr.msra.gmra.mxu0 %v534_v49 }
 0x2a7   :  { %v476_v53 = vpop.permute.xlu0 %475  ;;  %v480_v59 = vpop.permute.xlu1 %479 }
 0x2a8   :  { %v486_v0 = vsel %vm274_vm9, %v480_v59, %v484_v51  ;;  %v488_v19 = vsel %vm274_vm9, %v476_v53, %v480_v59 }
 0x2a9   :  { %v530_v63 = vmul.f32 %v524_v54, %v488_v19  ;;  %v531_v57 = vmul.f32 %v525_v56, %v486_v0 }
 0x2ab   :  { %v536_v1 = vadd.f32 %v530_v63, %v509_v60  ;;  %v537_v2 = vadd.f32 %v531_v57, %v510_v62 }
 0x2ad   :  { %631 = vmatmul.f32.gmra.mxu3 %v536_v1  ;;  %654 = vmatmul.f32.gmra.mxu0 %v537_v2 }
 0x2c8   :  { %v675_v50 = vpop.f32.mrf.mxu1 }
 0x2d0   :  { %v678_v6 = vpop.f32.mrf.mxu1 }
 0x322   :  { %v652_v3 = vpop.f32.mrf.mxu0 }
 0x328   :  { %v629_v58 = vpop.f32.mrf.mxu3 }
 0x329   :  { %v653_v4 = vadd.f32 %v652_v3, %v629_v58 }
 0x32a   :  { %v655_v7 = vpop.f32.mrf.mxu0 }
 0x32b   :  { %v676_v5 = vadd.f32 %v675_v50, %v653_v4 }
 0x32d   :  { %681 = vst [vmem:[#allocation14] sm:$0xff] %v676_v5 }
 0x330   :  { %v632_v61 = vpop.f32.mrf.mxu3 }
 0x331   :  { %v656_v33 = vadd.f32 %v655_v7, %v632_v61 }
 0x333   :  { %v679_v15 = vadd.f32 %v678_v6, %v656_v33 }
 0x335   :  { %682 = vst [vmem:[#allocation14 + $0x8] sm:$0xff] %v679_v15 }
 0x336   :  { %695 = dma.vmem_to_hbm [thread:$0]  %s688_s29, 256, %s690_s8, [#allocation5], %s934_s15, %s934_s15, %s935_s16  }
 0x337   :  { %927 = dma.done.wait [#allocation5], 256  }
 0x338   :  { %928 = vsyncadd [#allocation5], 4294967040 }
 0x339   :  { %700 = vsyncpa [#allocation4], 1 }
 0x33a   :  { %701 = vsyncpa [#allocation7], 1 }
 0x33b   :  { %702 = vsyncpa [#allocation10], 1 }
 0x33c   :  { %703 = vsyncpa [#allocation13], 1 }
 0x33d   :  { %704 = vsyncpa [#allocation5], 1 }

</bundles_post_ra>
